<compile_context>
chip_gen: v5e
topology: v5e:2x2
jax: 0.10.0
libtpu: 0.0.40
codegen_flags: <defaults>
</compile_context>

<pallas_src>
import functools

import jax
import jax.numpy as jnp
from jax.experimental import pallas as pl
from jax.experimental.pallas import tpu as pltpu


def _round_up(x, m):
    return ((x + m - 1) // m) * m


def _transform_kernel(head_dim, col_info,
                      img_ref, w_ref, b_ref, tp_ref, ta_ref, to_ref, out_ref):
    """Per-batch-tile fused 3-head CLIP logits with image linear transforms.

    img_ref: [TB, D]        bf16 image-feature tile
    w_ref:   [D, 3D]        bf16 stacked, pre-transposed img_transform weights
    b_ref:   [1, 3D]        f32 stacked biases
    t*_ref:  [D, C_h_pad]   bf16 per-head normalized, scale-premultiplied text
    out_ref: [TB, C_pad]    f32 fused logits slab (128-aligned per-head cols)
    """
    # All three Linear(D, D) heads in one MXU matmul: [TB, D] @ [D, 3D].
    h = jnp.dot(img_ref[...], w_ref[...], preferred_element_type=jnp.float32)
    h = h + b_ref[...]

    for i, t_ref in enumerate((tp_ref, ta_ref, to_ref)):
        col, width = col_info[i]
        seg = h[:, i * head_dim:(i + 1) * head_dim]               # [TB, D]
        ssq = jnp.sum(seg * seg, axis=-1, keepdims=True)          # [TB, 1]
        seg_n = (seg * jax.lax.rsqrt(jnp.maximum(ssq, 1e-12))
                 ).astype(jnp.bfloat16)
        # Dense per-head matmul; 128-aligned, lane-dense store.
        out_ref[:, col:col + width] = jnp.dot(
            seg_n, t_ref[...], preferred_element_type=jnp.float32)


def _plain_kernel(col_info, img_ref, tp_ref, ta_ref, to_ref, out_ref):
    """Per-batch-tile fused 3-head CLIP logits without the image transform.

    img_ref: [TB, D] f32 image-feature tile (norm taken on raw features).
    """
    img = img_ref[...]
    ssq = jnp.sum(img * img, axis=-1, keepdims=True)
    img_n = (img * jax.lax.rsqrt(jnp.maximum(ssq, 1e-12))).astype(jnp.bfloat16)
    for i, t_ref in enumerate((tp_ref, ta_ref, to_ref)):
        col, width = col_info[i]
        out_ref[:, col:col + width] = jnp.dot(
            img_n, t_ref[...], preferred_element_type=jnp.float32)


def clip_fused_logits(batch_img, txt_mats, w_all=None, b_all=None,
                      head_dim=None, batch_tile=256):
    """Single fused pallas_call, gridded over the batch dimension."""
    B, D = batch_img.shape
    widths = tuple(int(t.shape[1]) for t in txt_mats)
    col_info, col = [], 0
    for w in widths:
        col_info.append((col, w))
        col += w
    col_info = tuple(col_info)
    c_pad = col

    # Batch tiling: one (TB, D) image tile and one (TB, C_pad) output tile in
    # flight per grid step; W / bias / text are VMEM-resident across the grid.
    tb = min(batch_tile, _round_up(B, 8))
    b_pad = _round_up(B, tb)
    if b_pad != B:
        batch_img = jnp.pad(batch_img, ((0, b_pad - B), (0, 0)))
    grid = (b_pad // tb,)

    img_spec = pl.BlockSpec((tb, D), lambda i: (i, 0))
    out_spec = pl.BlockSpec((tb, c_pad), lambda i: (i, 0))

    def resident(arr):
        return pl.BlockSpec(arr.shape, lambda i: (0, 0))

    txt_specs = [resident(t) for t in txt_mats]

    # VMEM budget: double-buffered streaming tiles + resident operands.
    nbytes = lambda a: a.size * a.dtype.itemsize
    resident_bytes = sum(nbytes(t) for t in txt_mats)
    if w_all is not None:
        resident_bytes += nbytes(w_all) + nbytes(b_all)
    tile_bytes = 2 * (tb * D * batch_img.dtype.itemsize + tb * c_pad * 4)
    est = int(1.5 * (2 * resident_bytes + tile_bytes))
    cp_kwargs = dict(dimension_semantics=("parallel",))   # v7x: 2 TCs over B
    if est > 16 * 1024 * 1024:                             # v5e scoped default
        cp_kwargs["vmem_limit_bytes"] = min(est, 64 * 1024 * 1024)
    compiler_params = pltpu.CompilerParams(**cp_kwargs)

    if w_all is not None:
        head_dim = D if head_dim is None else head_dim
        kernel = functools.partial(_transform_kernel, head_dim, col_info)
        in_specs = [img_spec, resident(w_all), resident(b_all)] + txt_specs
        args = (batch_img, w_all, b_all) + tuple(txt_mats)
    else:
        # Transform disabled: do not pass (or DMA) W / b at all.
        kernel = functools.partial(_plain_kernel, col_info)
        in_specs = [img_spec] + txt_specs
        args = (batch_img,) + tuple(txt_mats)

    fused = pl.pallas_call(
        kernel,
        grid=grid,
        out_shape=jax.ShapeDtypeStruct((b_pad, c_pad), jnp.float32),
        in_specs=in_specs,
        out_specs=out_spec,
        compiler_params=compiler_params,
    )(*args)
    return fused[:B]


class CLIPInterfaceHieJax:
    """JAX/Pallas re-implementation of CLIPInterfaceHie.forward().

    Text-side work (encoder-output normalization, exp(logit_scale), transpose,
    lane padding) is precomputed once here; only the batch_img-dependent math
    runs per forward, inside one fused, batch-gridded Pallas kernel.
    """
    # TODO(synk): the full CLIP text/image transformer encoders are not
    # translated; per-head text features are synthesized deterministically.

    def __init__(self, key, feat_dim, n_pair, n_attr, n_obj,
                 enable_img_transform=1):
        self.enable_img_transform = int(enable_img_transform)
        self.feat_dim = feat_dim
        self.n_classes = (n_pair, n_attr, n_obj)
        ks = jax.random.split(key, 10)
        f32 = jnp.float32

        # "text encoder" outputs (stand-ins for self.text_encoder(...)).
        text_pair = jax.random.normal(ks[0], (n_pair, feat_dim), f32)
        text_attr = jax.random.normal(ks[1], (n_attr, feat_dim), f32)
        text_obj = jax.random.normal(ks[2], (n_obj, feat_dim), f32)

        # img_transform ModuleDict: three Linear(D, D) heads (torch layout).
        s = 1.0 / jnp.sqrt(jnp.float32(feat_dim))
        w_pair = jax.random.uniform(ks[3], (feat_dim, feat_dim), f32, -s, s)
        b_pair = jax.random.uniform(ks[4], (feat_dim,), f32, -s, s)
        w_attr = jax.random.uniform(ks[5], (feat_dim, feat_dim), f32, -s, s)
        b_attr = jax.random.uniform(ks[6], (feat_dim,), f32, -s, s)
        w_obj = jax.random.uniform(ks[7], (feat_dim, feat_dim), f32, -s, s)
        b_obj = jax.random.uniform(ks[8], (feat_dim,), f32, -s, s)

        # CLIP logit_scale parameter; exp() folded into the text matrices.
        logit_scale = jnp.asarray(jnp.log(1.0 / 0.07), f32)
        scale = jnp.exp(logit_scale)

        def _norm_rows(t):
            return t / jnp.maximum(
                jnp.linalg.norm(t, axis=-1, keepdims=True), 1e-12)

        txt_list = [_norm_rows(text_pair) * scale,
                    _norm_rows(text_attr) * scale,
                    _norm_rows(text_obj) * scale]

        # Dense per-head [D, C_h_pad] bf16 text matrices; each head's columns
        # start at a multiple of 128 so kernel stores are lane-dense.
        self.txt_mats, self.col_starts = [], []
        col = 0
        for t, n in zip(txt_list, self.n_classes):
            c_h_pad = _round_up(n, 128)
            mat = jnp.zeros((feat_dim, c_h_pad), f32).at[:, :n].set(t.T)
            self.txt_mats.append(mat.astype(jnp.bfloat16))
            self.col_starts.append(col)
            col += c_h_pad

        if self.enable_img_transform:
            # Stacked, pre-transposed weights: img @ w_all == per-head x @ W.T.
            self.w_all = jnp.concatenate(
                [w_pair.T, w_attr.T, w_obj.T], axis=1).astype(jnp.bfloat16)
            self.b_all = jnp.concatenate(
                [b_pair, b_attr, b_obj])[None, :].astype(f32)     # [1, 3D]
        else:
            self.w_all = None
            self.b_all = None

        # Raw parameters kept only for the pure-JAX reference check.
        self._raw_text = (text_pair, text_attr, text_obj)
        self._raw_w = (w_pair, w_attr, w_obj)
        self._raw_b = (b_pair, b_attr, b_obj)
        self._scale = scale

    def forward(self, batch_img):
        # batch_img: [B, D] image features.
        if self.enable_img_transform:
            img = batch_img.astype(jnp.bfloat16)   # kernel uses bf16 anyway
        else:
            img = batch_img.astype(jnp.float32)    # norm on raw f32 features
        fused = clip_fused_logits(img, self.txt_mats, self.w_all, self.b_all,
                                  head_dim=self.feat_dim)
        outs = []
        for start, n in zip(self.col_starts, self.n_classes):
            outs.append(fused[:, start:start + n])
        return tuple(outs)   # (logits, logits_attr, logits_obj)


def _reference_forward(batch_img, texts, weights, biases, scale, enable):
    """Pure-JAX f32 reference mirroring CLIPInterfaceHie.forward()."""
    def norm(x):
        return x / jnp.maximum(jnp.linalg.norm(x, axis=-1, keepdims=True),
                               1e-12)
    txt_n = [norm(t) for t in texts]
    outs = []
    if enable:
        for w, b, t in zip(weights, biases, txt_n):
            h = batch_img @ w.T + b
            outs.append(scale * (norm(h) @ t.T))
    else:
        img_n = norm(batch_img)
        for t in txt_n:
            outs.append(scale * (img_n @ t.T))
    return outs


if __name__ == "__main__":
    key = jax.random.PRNGKey(0)
    k_img, k_mod = jax.random.split(key)

    B, D = 8, 128          # batch of image feature vectors
    N_PAIR, N_ATTR, N_OBJ = 16, 8, 8

    batch_img = jax.random.normal(k_img, (B, D), jnp.float32)

    # Transform-enabled path (fused Linear + 3 per-head dots, batch-gridded).
    module = CLIPInterfaceHieJax(k_mod, D, N_PAIR, N_ATTR, N_OBJ,
                                 enable_img_transform=1)
    logits, logits_attr, logits_obj = module.forward(batch_img)
    jax.block_until_ready((logits, logits_attr, logits_obj))
    assert logits.shape == (B, N_PAIR)
    assert logits_attr.shape == (B, N_ATTR)
    assert logits_obj.shape == (B, N_OBJ)
    ref = _reference_forward(batch_img, module._raw_text, module._raw_w,
                             module._raw_b, module._scale, True)
    for o, r in zip((logits, logits_attr, logits_obj), ref):
        assert jnp.allclose(o, r, atol=0.2, rtol=0.05), \
            float(jnp.max(jnp.abs(o - r)))

    # Transform-disabled path (no W/b DMA, shared normalized image).
    module_nt = CLIPInterfaceHieJax(k_mod, D, N_PAIR, N_ATTR, N_OBJ,
                                    enable_img_transform=0)
    l2, la2, lo2 = module_nt.forward(batch_img)
    jax.block_until_ready((l2, la2, lo2))
    assert l2.shape == (B, N_PAIR)
    assert la2.shape == (B, N_ATTR)
    assert lo2.shape == (B, N_OBJ)
    ref_nt = _reference_forward(batch_img, module_nt._raw_text,
                                module_nt._raw_w, module_nt._raw_b,
                                module_nt._scale, False)
    for o, r in zip((l2, la2, lo2), ref_nt):
        assert jnp.allclose(o, r, atol=0.2, rtol=0.05), \
            float(jnp.max(jnp.abs(o - r)))

    print("KERNEL_OK")
</pallas_src>

<mosaic_0001>
module attributes {stable_mosaic.version = 11 : i64} {
  func.func @_transform_kernel(%arg0: i32, %arg1: memref<8x128xbf16, #tpu.memory_space<vmem>>, %arg2: memref<128x384xbf16, #tpu.memory_space<vmem>>, %arg3: memref<1x384xf32, #tpu.memory_space<vmem>>, %arg4: memref<128x128xbf16, #tpu.memory_space<vmem>>, %arg5: memref<128x128xbf16, #tpu.memory_space<vmem>>, %arg6: memref<128x128xbf16, #tpu.memory_space<vmem>>, %arg7: memref<8x384xf32, #tpu.memory_space<vmem>>) attributes {dimension_semantics = [#tpu.dimension_semantics<parallel>], iteration_bounds = array<i64: 1>, scalar_prefetch = 0 : i64, scratch_operands = 0 : i64, tpu.core_type = #tpu.core_type<tc>, window_params = [{transform_indices = @transform_0, window_bounds = array<i64: 8, 128>}, {pipeline_mode = #tpu.pipeline_mode<synchronous>, transform_indices = @transform_1, window_bounds = array<i64: 128, 384>}, {pipeline_mode = #tpu.pipeline_mode<synchronous>, transform_indices = @transform_2, window_bounds = array<i64: 1, 384>}, {pipeline_mode = #tpu.pipeline_mode<synchronous>, transform_indices = @transform_3, window_bounds = array<i64: 128, 128>}, {pipeline_mode = #tpu.pipeline_mode<synchronous>, transform_indices = @transform_4, window_bounds = array<i64: 128, 128>}, {pipeline_mode = #tpu.pipeline_mode<synchronous>, transform_indices = @transform_5, window_bounds = array<i64: 128, 128>}, {transform_indices = @transform_6, window_bounds = array<i64: 8, 384>}]} {
    %c0 = arith.constant 0 : index
    %c0_0 = arith.constant 0 : index
    %0 = vector.load %arg1[%c0, %c0_0] : memref<8x128xbf16, #tpu.memory_space<vmem>>, vector<8x128xbf16>
    %c0_1 = arith.constant 0 : index
    %c0_2 = arith.constant 0 : index
    %1 = vector.load %arg2[%c0_1, %c0_2] : memref<128x384xbf16, #tpu.memory_space<vmem>>, vector<128x384xbf16>
    %cst = arith.constant dense<0.000000e+00> : vector<8x384xf32>
    %2 = tpu.matmul %0, %1, %cst {dimension_numbers = #tpu.dot_dimension_numbers<[1], [0], [0], [1], [0, 0, 1, 1], [], []>} : vector<8x128xbf16>, vector<128x384xbf16>, vector<8x384xf32> -> vector<8x384xf32>
    %c0_3 = arith.constant 0 : index
    %c0_4 = arith.constant 0 : index
    %3 = vector.load %arg3[%c0_3, %c0_4] : memref<1x384xf32, #tpu.memory_space<vmem>>, vector<1x384xf32>
    %4 = vector.broadcast %3 : vector<1x384xf32> to vector<8x384xf32>
    %5 = arith.addf %2, %4 : vector<8x384xf32>
    %6 = vector.extract_strided_slice %5 {offsets = [0, 0], sizes = [8, 128], strides = [1, 1]} : vector<8x384xf32> to vector<8x128xf32>
    %7 = arith.mulf %6, %6 : vector<8x128xf32>
    %cst_5 = arith.constant dense<0.000000e+00> : vector<8xf32>
    %8 = vector.multi_reduction <add>, %7, %cst_5 [1] : vector<8x128xf32> to vector<8xf32>
    %9 = vector.shape_cast %8 : vector<8xf32> to vector<8x1xf32>
    %cst_6 = arith.constant 9.99999996E-13 : f32
    %10 = vector.broadcast %cst_6 : f32 to vector<8x1xf32>
    %11 = arith.maximumf %9, %10 : vector<8x1xf32>
    %12 = math.rsqrt %11 : vector<8x1xf32>
    %13 = vector.broadcast %12 : vector<8x1xf32> to vector<8x128xf32>
    %14 = arith.mulf %6, %13 : vector<8x128xf32>
    %15 = arith.truncf %14 : vector<8x128xf32> to vector<8x128xbf16>
    %c0_7 = arith.constant 0 : index
    %c0_8 = arith.constant 0 : index
    %16 = vector.load %arg4[%c0_7, %c0_8] : memref<128x128xbf16, #tpu.memory_space<vmem>>, vector<128x128xbf16>
    %cst_9 = arith.constant dense<0.000000e+00> : vector<8x128xf32>
    %17 = tpu.matmul %15, %16, %cst_9 {dimension_numbers = #tpu.dot_dimension_numbers<[1], [0], [0], [1], [0, 0, 1, 1], [], []>} : vector<8x128xbf16>, vector<128x128xbf16>, vector<8x128xf32> -> vector<8x128xf32>
    %c0_10 = arith.constant 0 : index
    %c0_11 = arith.constant 0 : index
    %18 = vector.load %arg7[%c0_10, %c0_11] : memref<8x384xf32, #tpu.memory_space<vmem>>, vector<8x128xf32>
    tpu.vector_store %arg7[%c0_10, %c0_11], %17 {strides = array<i32>} : memref<8x384xf32, #tpu.memory_space<vmem>>, vector<8x128xf32>,
    %19 = vector.extract_strided_slice %5 {offsets = [0, 128], sizes = [8, 128], strides = [1, 1]} : vector<8x384xf32> to vector<8x128xf32>
    %20 = arith.mulf %19, %19 : vector<8x128xf32>
    %cst_12 = arith.constant dense<0.000000e+00> : vector<8xf32>
    %21 = vector.multi_reduction <add>, %20, %cst_12 [1] : vector<8x128xf32> to vector<8xf32>
    %22 = vector.shape_cast %21 : vector<8xf32> to vector<8x1xf32>
    %cst_13 = arith.constant 9.99999996E-13 : f32
    %23 = vector.broadcast %cst_13 : f32 to vector<8x1xf32>
    %24 = arith.maximumf %22, %23 : vector<8x1xf32>
    %25 = math.rsqrt %24 : vector<8x1xf32>
    %26 = vector.broadcast %25 : vector<8x1xf32> to vector<8x128xf32>
    %27 = arith.mulf %19, %26 : vector<8x128xf32>
    %28 = arith.truncf %27 : vector<8x128xf32> to vector<8x128xbf16>
    %c0_14 = arith.constant 0 : index
    %c0_15 = arith.constant 0 : index
    %29 = vector.load %arg5[%c0_14, %c0_15] : memref<128x128xbf16, #tpu.memory_space<vmem>>, vector<128x128xbf16>
    %cst_16 = arith.constant dense<0.000000e+00> : vector<8x128xf32>
    %30 = tpu.matmul %28, %29, %cst_16 {dimension_numbers = #tpu.dot_dimension_numbers<[1], [0], [0], [1], [0, 0, 1, 1], [], []>} : vector<8x128xbf16>, vector<128x128xbf16>, vector<8x128xf32> -> vector<8x128xf32>
    %c0_17 = arith.constant 0 : index
    %c128 = arith.constant 128 : index
    %31 = vector.load %arg7[%c0_17, %c128] : memref<8x384xf32, #tpu.memory_space<vmem>>, vector<8x128xf32>
    tpu.vector_store %arg7[%c0_17, %c128], %30 {strides = array<i32>} : memref<8x384xf32, #tpu.memory_space<vmem>>, vector<8x128xf32>,
    %32 = vector.extract_strided_slice %5 {offsets = [0, 256], sizes = [8, 128], strides = [1, 1]} : vector<8x384xf32> to vector<8x128xf32>
    %33 = arith.mulf %32, %32 : vector<8x128xf32>
    %cst_18 = arith.constant dense<0.000000e+00> : vector<8xf32>
    %34 = vector.multi_reduction <add>, %33, %cst_18 [1] : vector<8x128xf32> to vector<8xf32>
    %35 = vector.shape_cast %34 : vector<8xf32> to vector<8x1xf32>
    %cst_19 = arith.constant 9.99999996E-13 : f32
    %36 = vector.broadcast %cst_19 : f32 to vector<8x1xf32>
    %37 = arith.maximumf %35, %36 : vector<8x1xf32>
    %38 = math.rsqrt %37 : vector<8x1xf32>
    %39 = vector.broadcast %38 : vector<8x1xf32> to vector<8x128xf32>
    %40 = arith.mulf %32, %39 : vector<8x128xf32>
    %41 = arith.truncf %40 : vector<8x128xf32> to vector<8x128xbf16>
    %c0_20 = arith.constant 0 : index
    %c0_21 = arith.constant 0 : index
    %42 = vector.load %arg6[%c0_20, %c0_21] : memref<128x128xbf16, #tpu.memory_space<vmem>>, vector<128x128xbf16>
    %cst_22 = arith.constant dense<0.000000e+00> : vector<8x128xf32>
    %43 = tpu.matmul %41, %42, %cst_22 {dimension_numbers = #tpu.dot_dimension_numbers<[1], [0], [0], [1], [0, 0, 1, 1], [], []>} : vector<8x128xbf16>, vector<128x128xbf16>, vector<8x128xf32> -> vector<8x128xf32>
    %c0_23 = arith.constant 0 : index
    %c256 = arith.constant 256 : index
    %44 = vector.load %arg7[%c0_23, %c256] : memref<8x384xf32, #tpu.memory_space<vmem>>, vector<8x128xf32>
    tpu.vector_store %arg7[%c0_23, %c256], %43 {strides = array<i32>} : memref<8x384xf32, #tpu.memory_space<vmem>>, vector<8x128xf32>,
    return
  }
  func.func @transform_0(%arg0: i32) -> (i32, i32) {
    %c0_i32 = arith.constant 0 : i32
    %c0_i32_0 = arith.constant 0 : i32
    return %arg0, %c0_i32 : i32, i32
  }
  func.func @transform_1(%arg0: i32) -> (i32, i32) {
    %c0_i32 = arith.constant 0 : i32
    %c0_i32_0 = arith.constant 0 : i32
    %c0_i32_1 = arith.constant 0 : i32
    return %c0_i32, %c0_i32_0 : i32, i32
  }
  func.func @transform_2(%arg0: i32) -> (i32, i32) {
    %c0_i32 = arith.constant 0 : i32
    %c0_i32_0 = arith.constant 0 : i32
    %c0_i32_1 = arith.constant 0 : i32
    return %c0_i32, %c0_i32_0 : i32, i32
  }
  func.func @transform_3(%arg0: i32) -> (i32, i32) {
    %c0_i32 = arith.constant 0 : i32
    %c0_i32_0 = arith.constant 0 : i32
    %c0_i32_1 = arith.constant 0 : i32
    return %c0_i32, %c0_i32_0 : i32, i32
  }
  func.func @transform_4(%arg0: i32) -> (i32, i32) {
    %c0_i32 = arith.constant 0 : i32
    %c0_i32_0 = arith.constant 0 : i32
    %c0_i32_1 = arith.constant 0 : i32
    return %c0_i32, %c0_i32_0 : i32, i32
  }
  func.func @transform_5(%arg0: i32) -> (i32, i32) {
    %c0_i32 = arith.constant 0 : i32
    %c0_i32_0 = arith.constant 0 : i32
    %c0_i32_1 = arith.constant 0 : i32
    return %c0_i32, %c0_i32_0 : i32, i32
  }
  func.func @transform_6(%arg0: i32) -> (i32, i32) {
    %c0_i32 = arith.constant 0 : i32
    %c0_i32_0 = arith.constant 0 : i32
    return %arg0, %c0_i32 : i32, i32
  }
}

</mosaic_0001>

<bundles_post_ra>
// kernel: tpu_custom_call.1
= control target key start
LH: loop header
LB: loop body
LE: loop exit
PB: predicated region body
PF: predicated region fallthrough
CT: control target
= control target key end

     0   :  { %11 = vsyncpa [#allocation3], 0  ;;  %s1141_s0 = inlined_call_operand.hbm [shape: bf16[8,128], index: 0, kind: input, shape index: {}]   ;;  %s1142_s1 = inlined_call_operand.hbm [shape: bf16[128,384], index: 1, kind: input, shape index: {}]   ;;  %s1143_s2 = inlined_call_operand.hbm [shape: f32[1,384], index: 2, kind: input, shape index: {}]   ;;  %s1144_s3 = inlined_call_operand.hbm [shape: bf16[128,128], index: 3, kind: input, shape index: {}]   ;;  %s1145_s4 = inlined_call_operand.hbm [shape: bf16[128,128], index: 4, kind: input, shape index: {}]   ;;  %s1146_s5 = inlined_call_operand.hbm [shape: bf16[128,128], index: 5, kind: input, shape index: {}]   ;;  %s1147_s6 = inlined_call_operand.hbm [shape: f32[8,384], index: 6, kind: output, shape index: {}]  }
   0x1   :  { %12 = vsyncpa [#allocation6], 0 }
   0x2   :  { %13 = vsyncpa [#allocation9], 0 }
   0x3   :  { %14 = vsyncpa [#allocation12], 0  ;;  %s31_s23 = sshll.u32 %s1142_s1, 4  ;;  %s32_s23 = int_to_ptr.hbm [resolvable:$true] %s31_s23 }
   0x4   :  { %15 = vsyncpa [#allocation4], 0  ;;  %s1059_s24 = smov [#allocation5]   ;;  %s55_s28 = sshll.u32 %s1144_s3, 4  ;;  %s56_s28 = int_to_ptr.hbm [resolvable:$true] %s55_s28 }
   0x5   :  { %s33_s25 = sshll.u32 %s1059_s24, 4  ;;  %s1060_s29 = smov 192   ;;  %s34_s25 = int_to_ptr.vmem [resolvable:$true] %s33_s25 }
   0x6   :  { %s1061_s30 = smov 12   ;;  %s1062_s7 = smov [#allocation8]  }
   0x7   :  { %39 = dma.hbm_to_vmem [thread:$0]  %s32_s23, 3072, %s34_s25, [#allocation6], %s1060_s29, %s1060_s29, %s1061_s30  }
   0x8   :  { %s57_s8 = sshll.u32 %s1062_s7, 4  ;;  %s1063_s9 = smov 64   ;;  %s58_s8 = int_to_ptr.vmem [resolvable:$true] %s57_s8 }
   0x9   :  { %s1064_s10 = smov 4   ;;  %s21_s12 = sshll.u32 %s1141_s0, 4  ;;  %s22_s12 = int_to_ptr.hbm [resolvable:$true] %s21_s12 }
   0xa   :  { %63 = dma.hbm_to_vmem [thread:$0]  %s56_s28, 1024, %s58_s8, [#allocation9], %s1063_s9, %s1063_s9, %s1064_s10  }
   0xb   :  { %s1065_s13 = smov [#allocation2]   ;;  %s45_s16 = sshll.u32 %s1143_s2, 4  ;;  %s46_s16 = int_to_ptr.hbm [resolvable:$true] %s45_s16 }
   0xc   :  { %s23_s14 = sshll.u32 %s1065_s13, 4  ;;  %s1066_s17 = smov [#allocation7]   ;;  %s24_s14 = int_to_ptr.vmem [resolvable:$true] %s23_s14 }
   0xd   :  { %26 = dma.hbm_to_vmem [thread:$0]  %s22_s12, 64, %s24_s14, [#allocation3]  }
   0xe   :  { %s47_s18 = sshll.u32 %s1066_s17, 4  ;;  %s68_s21 = sshll.u32 %s1145_s4, 4  ;;  %s48_s18 = int_to_ptr.vmem [resolvable:$true] %s47_s18  ;;  %s69_s21 = int_to_ptr.hbm [resolvable:$true] %s68_s21 }
   0xf   :  { %50 = dma.hbm_to_vmem [thread:$0]  %s46_s16, 48, %s48_s18, [#allocation6]  }
  0x10   :  { %s81_s23 = sshll.u32 %s1146_s5, 4  ;;  %s1067_s24 = smov [#allocation10]   ;;  %s82_s23 = int_to_ptr.hbm [resolvable:$true] %s81_s23 }
  0x11   :  { %s70_s25 = sshll.u32 %s1067_s24, 4  ;;  %s1068_s2 = smov [#allocation11]   ;;  %s71_s25 = int_to_ptr.vmem [resolvable:$true] %s70_s25 }
  0x12   :  { %76 = dma.hbm_to_vmem [thread:$0]  %s69_s21, 1024, %s71_s25, [#allocation9], %s1063_s9, %s1063_s9, %s1064_s10  }
  0x13   :  { %s83_s26 = sshll.u32 %s1068_s2, 4  ;;  %s84_s26 = int_to_ptr.vmem [resolvable:$true] %s83_s26 }
  0x14   :  { %89 = dma.hbm_to_vmem [thread:$0]  %s82_s23, 1024, %s84_s26, [#allocation12], %s1063_s9, %s1063_s9, %s1064_s10  }
  0x15   :  { %1049 = dma.done.wait [#allocation3], 64  }
  0x16   :  { %1050 = vsyncadd [#allocation3], 4294967232 }
  0x17   :  { %1051 = dma.done.wait [#allocation6], 3120  }
  0x18   :  { %1052 = vsyncadd [#allocation6], 4294964176 }
  0x19   :  { %1053 = dma.done.wait [#allocation9], 2048  }
  0x1a   :  { %1054 = vsyncadd [#allocation9], 4294965248 }
  0x1b   :  { %1055 = dma.done.wait [#allocation12], 1024  }
  0x1c   :  { %1056 = vsyncadd [#allocation12], 4294966272  ;;  %v710_v0 = vld [vmem:[#allocation5 + $0xa8] sm:$0xf]  ;;  %v838_v1 = vld [vmem:[#allocation5 + $0xb0] sm:$0xf0] }
  0x1d   :  { %v837_v2 = vld [vmem:[#allocation5 + $0xac] sm:$0xf]  ;;  %v711_v3 = vor.u32 %v838_v1, %v710_v0  ;;  %v712_v4 = vld [vmem:[#allocation5 + $0xb4] sm:$0xf0]  ;;  %v718_v5 = vld [vmem:[#allocation5 + $0xb0] sm:$0xf] }
  0x1e   :  { %v839_v6 = vld [vmem:[#allocation5 + $0xb8] sm:$0xf0]  ;;  %v715_v7 = vor.u32 %v837_v2, %v712_v4  ;;  %v698_v9 = vld [vmem:[#allocation5 + $0x90] sm:$0xf]  ;;  %v834_v11 = vld [vmem:[#allocation5 + $0x94] sm:$0xf] }
  0x1f   :  { %v719_v8 = vor.u32 %v839_v6, %v718_v5  ;;  %v835_v10 = vld [vmem:[#allocation5 + $0x98] sm:$0xf0]  ;;  %283 = vmatpush.bf16.msra.mxu0 %v711_v3  ;;  %v700_v13 = vld [vmem:[#allocation5 + $0x9c] sm:$0xf0]  ;;  %v706_v14 = vld [vmem:[#allocation5 + $0x98] sm:$0xf] }
  0x20   :  { %v699_v12 = vor.u32 %v835_v10, %v698_v9  ;;  %v836_v15 = vld [vmem:[#allocation5 + $0xa0] sm:$0xf0]  ;;  %296 = vmatpush.bf16.msra.mxu1 %v715_v7  ;;  %v703_v16 = vor.u32 %v834_v11, %v700_v13  ;;  %v686_v18 = vld [vmem:[#allocation5 + $0x78] sm:$0xf]  ;;  %v831_v20 = vld [vmem:[#allocation5 + $0x7c] sm:$0xf] }
  0x21   :  { %309 = vmatpush.bf16.msra.mxu2 %v719_v8  ;;  %v707_v17 = vor.u32 %v836_v15, %v706_v14  ;;  %v832_v19 = vld [vmem:[#allocation5 + $0x80] sm:$0xf0]  ;;  %v688_v21 = vld [vmem:[#allocation5 + $0x84] sm:$0xf0]  ;;  %v694_v22 = vld [vmem:[#allocation5 + $0x80] sm:$0xf] }
  0x22   :  { %v833_v23 = vld [vmem:[#allocation5 + $0x88] sm:$0xf0]  ;;  %v687_v24 = vor.u32 %v832_v19, %v686_v18  ;;  %v691_v25 = vor.u32 %v831_v20, %v688_v21  ;;  %v674_v27 = vld [vmem:[#allocation5 + $0x60] sm:$0xf]  ;;  %v828_v29 = vld [vmem:[#allocation5 + $0x64] sm:$0xf] }
  0x23   :  { %284 = vmatpush.bf16.msra.mxu0 %v699_v12  ;;  %v695_v26 = vor.u32 %v833_v23, %v694_v22  ;;  %v829_v28 = vld [vmem:[#allocation5 + $0x68] sm:$0xf0]  ;;  %v676_v30 = vld [vmem:[#allocation5 + $0x6c] sm:$0xf0]  ;;  %v682_v31 = vld [vmem:[#allocation5 + $0x68] sm:$0xf] }
  0x24   :  { %297 = vmatpush.bf16.msra.mxu1 %v703_v16  ;;  %v830_v32 = vld [vmem:[#allocation5 + $0x70] sm:$0xf0]  ;;  %v675_v33 = vor.u32 %v829_v28, %v674_v27  ;;  %v679_v34 = vor.u32 %v828_v29, %v676_v30  ;;  %v662_v36 = vld [vmem:[#allocation5 + $0x48] sm:$0xf]  ;;  %v825_v38 = vld [vmem:[#allocation5 + $0x4c] sm:$0xf] }
  0x25   :  { %310 = vmatpush.bf16.msra.mxu2 %v707_v17  ;;  %v683_v35 = vor.u32 %v830_v32, %v682_v31  ;;  %v826_v37 = vld [vmem:[#allocation5 + $0x50] sm:$0xf0]  ;;  %v664_v39 = vld [vmem:[#allocation5 + $0x54] sm:$0xf0]  ;;  %v670_v40 = vld [vmem:[#allocation5 + $0x50] sm:$0xf] }
  0x26   :  { %v827_v41 = vld [vmem:[#allocation5 + $0x58] sm:$0xf0]  ;;  %v663_v42 = vor.u32 %v826_v37, %v662_v36  ;;  %v667_v43 = vor.u32 %v825_v38, %v664_v39  ;;  %v650_v45 = vld [vmem:[#allocation5 + $0x30] sm:$0xf]  ;;  %v822_v47 = vld [vmem:[#allocation5 + $0x34] sm:$0xf] }
  0x27   :  { %285 = vmatpush.bf16.msra.mxu0 %v687_v24  ;;  %v671_v44 = vor.u32 %v827_v41, %v670_v40  ;;  %v823_v46 = vld [vmem:[#allocation5 + $0x38] sm:$0xf0]  ;;  %v652_v48 = vld [vmem:[#allocation5 + $0x3c] sm:$0xf0]  ;;  %v658_v49 = vld [vmem:[#allocation5 + $0x38] sm:$0xf] }
  0x28   :  { %298 = vmatpush.bf16.msra.mxu1 %v691_v25  ;;  %v824_v50 = vld [vmem:[#allocation5 + $0x40] sm:$0xf0]  ;;  %v651_v51 = vor.u32 %v823_v46, %v650_v45  ;;  %v655_v52 = vor.u32 %v822_v47, %v652_v48  ;;  %v638_v54 = vld [vmem:[#allocation5 + $0x18] sm:$0xf]  ;;  %v819_v56 = vld [vmem:[#allocation5 + $0x1c] sm:$0xf] }
  0x29   :  { %311 = vmatpush.bf16.msra.mxu2 %v695_v26  ;;  %v659_v53 = vor.u32 %v824_v50, %v658_v49  ;;  %v820_v55 = vld [vmem:[#allocation5 + $0x20] sm:$0xf0]  ;;  %v640_v57 = vld [vmem:[#allocation5 + $0x24] sm:$0xf0]  ;;  %v646_v58 = vld [vmem:[#allocation5 + $0x20] sm:$0xf] }
  0x2a   :  { %v821_v59 = vld [vmem:[#allocation5 + $0x28] sm:$0xf0]  ;;  %v639_v60 = vor.u32 %v820_v55, %v638_v54  ;;  %v643_v61 = vor.u32 %v819_v56, %v640_v57  ;;  %v626_v63 = vld [vmem:[#allocation5] sm:$0xf]  ;;  %v816_v1 = vld [vmem:[#allocation5 + $0x4] sm:$0xf] }
  0x2b   :  { %286 = vmatpush.bf16.msra.mxu0 %v675_v33  ;;  %v647_v62 = vor.u32 %v821_v59, %v646_v58  ;;  %v817_v0 = vld [vmem:[#allocation5 + $0x8] sm:$0xf0]  ;;  %v628_v2 = vld [vmem:[#allocation5 + $0xc] sm:$0xf0]  ;;  %v634_v3 = vld [vmem:[#allocation5 + $0x8] sm:$0xf] }
  0x2c   :  { %299 = vmatpush.bf16.msra.mxu1 %v679_v34  ;;  %v818_v4 = vld [vmem:[#allocation5 + $0x10] sm:$0xf0]  ;;  %v627_v5 = vor.u32 %v817_v0, %v626_v63  ;;  %v631_v6 = vor.u32 %v816_v1, %v628_v2  ;;  %v114_v8 = vld [vmem:[#allocation2] sm:$0xf]  ;;  %v147_v12 = vld [vmem:[#allocation7] sm:$0x7] }
  0x2d   :  { %312 = vmatpush.bf16.msra.mxu2 %v683_v35  ;;  %v635_v7 = vor.u32 %v818_v4, %v634_v3  ;;  %v847_v9 = vld [vmem:[#allocation8 + $0x38] sm:$0xff]  ;;  %v846_v11 = vld [vmem:[#allocation8 + $0x30] sm:$0xff]  ;;  %v149_v13 = vperm.slane %v147_v12, 0  ;;  %v150_v16 = vperm.slane %v147_v12, 1  ;;  %v151_v19 = vperm.slane %v147_v12, 2  ;;  %v845_v28 = vld [vmem:[#allocation8 + $0x28] sm:$0xff] }
  0x2e   :  { %v863_v10 = vld [vmem:[#allocation11 + $0x38] sm:$0xff]  ;;  %402 = vmatpush.bf16.msra.mxu3 %v847_v9  ;;  %v862_v30 = vld [vmem:[#allocation11 + $0x30] sm:$0xff]  ;;  %v844_v31 = vld [vmem:[#allocation8 + $0x20] sm:$0xff]  ;;  %s1069_s4 = smov [#allocation13]   ;;  %s611_s29 = sshll.u32 %s1147_s6, 4  ;;  %s612_s29 = int_to_ptr.hbm [resolvable:$true] %s611_s29 }
  0x2f   :  { %287 = vmatpush.bf16.msra.mxu0 %v663_v42  ;;  %v855_v29 = vld [vmem:[#allocation10 + $0x38] sm:$0xff]  ;;  %v854_v32 = vld [vmem:[#allocation10 + $0x30] sm:$0xff]  ;;  %v861_v33 = vld [vmem:[#allocation11 + $0x28] sm:$0xff]  ;;  %s609_s5 = sshll.u32 %s1069_s4, 4  ;;  %s610_s5 = int_to_ptr.vmem [resolvable:$true] %s609_s5 }
  0x30   :  { %300 = vmatpush.bf16.msra.mxu1 %v667_v43  ;;  %v843_v34 = vld [vmem:[#allocation8 + $0x18] sm:$0xff]  ;;  %v853_v35 = vld [vmem:[#allocation10 + $0x28] sm:$0xff]  ;;  %v860_v36 = vld [vmem:[#allocation11 + $0x20] sm:$0xff] }
  0x31   :  { %313 = vmatpush.bf16.msra.mxu2 %v671_v44  ;;  %v842_v37 = vld [vmem:[#allocation8 + $0x10] sm:$0xff]  ;;  %v852_v38 = vld [vmem:[#allocation10 + $0x20] sm:$0xff]  ;;  %v859_v39 = vld [vmem:[#allocation11 + $0x18] sm:$0xff] }
  0x32   :  { %403 = vmatpush.bf16.msra.mxu3 %v846_v11  ;;  %v841_v40 = vld [vmem:[#allocation8 + $0x8] sm:$0xff]  ;;  %v851_v41 = vld [vmem:[#allocation10 + $0x18] sm:$0xff]  ;;  %v858_v42 = vld [vmem:[#allocation11 + $0x10] sm:$0xff] }
  0x33   :  { %288 = vmatpush.bf16.msra.mxu0 %v651_v51  ;;  %v840_v43 = vld [vmem:[#allocation8] sm:$0xff]  ;;  %v850_v44 = vld [vmem:[#allocation10 + $0x10] sm:$0xff]  ;;  %v857_v45 = vld [vmem:[#allocation11 + $0x8] sm:$0xff] }
  0x34   :  { %301 = vmatpush.bf16.msra.mxu1 %v655_v52  ;;  %v849_v46 = vld [vmem:[#allocation10 + $0x8] sm:$0xff]  ;;  %v856_v47 = vld [vmem:[#allocation11] sm:$0xff] }
  0x35   :  { %314 = vmatpush.bf16.msra.mxu2 %v659_v53  ;;  %v848_v48 = vld [vmem:[#allocation10] sm:$0xff] }
  0x36   :  { %404 = vmatpush.bf16.msra.mxu3 %v845_v28 }
  0x37   :  { %289 = vmatpush.bf16.msra.mxu0 %v639_v60 }
  0x38   :  { %302 = vmatpush.bf16.msra.mxu1 %v643_v61 }
  0x39   :  { %315 = vmatpush.bf16.msra.mxu2 %v647_v62 }
  0x3a   :  { %405 = vmatpush.bf16.msra.mxu3 %v844_v31 }
  0x3b   :  { %290 = vmatpush.bf16.msra.mxu0 %v627_v5 }
  0x3c   :  { %303 = vmatpush.bf16.msra.mxu1 %v631_v6 }
  0x3d   :  { %316 = vmatpush.bf16.msra.mxu2 %v635_v7 }
  0x3e   :  { %291 = vmatmul.bf16.vlgmr.msra.gmra.mxu0 %v114_v8  ;;  %406 = vmatpush.bf16.msra.mxu3 %v843_v34 }
  0x3f   :  { %304 = vmatmul.bf16.vlgmr.msra.gmra.mxu1 %v114_v8  ;;  %496 = vmatpush.bf16.msrb.mxu0 %v855_v29 }
  0x40   :  { %317 = vmatmul.bf16.vlgmr.msra.gmra.mxu2 %v114_v8  ;;  %590 = vmatpush.bf16.msrb.mxu1 %v863_v10 }
  0x42   :  { %407 = vmatpush.bf16.msra.mxu3 %v842_v37 }
  0x43   :  { %497 = vmatpush.bf16.msrb.mxu0 %v854_v32 }
  0x44   :  { %591 = vmatpush.bf16.msrb.mxu1 %v862_v30 }
  0x46   :  { %408 = vmatpush.bf16.msra.mxu3 %v841_v40 }
  0x47   :  { %498 = vmatpush.bf16.msrb.mxu0 %v853_v35 }
  0x48   :  { %592 = vmatpush.bf16.msrb.mxu1 %v861_v33 }
  0x4a   :  { %409 = vmatpush.bf16.msra.mxu3 %v840_v43 }
  0x4b   :  { %499 = vmatpush.bf16.msrb.mxu0 %v852_v38 }
  0x4c   :  { %593 = vmatpush.bf16.msrb.mxu1 %v860_v36 }
  0x4f   :  { %500 = vmatpush.bf16.msrb.mxu0 %v851_v41 }
  0x50   :  { %594 = vmatpush.bf16.msrb.mxu1 %v859_v39 }
  0x53   :  { %501 = vmatpush.bf16.msrb.mxu0 %v850_v44 }
  0x54   :  { %595 = vmatpush.bf16.msrb.mxu1 %v858_v42 }
  0x57   :  { %502 = vmatpush.bf16.msrb.mxu0 %v849_v46 }
  0x58   :  { %596 = vmatpush.bf16.msrb.mxu1 %v857_v45 }
  0x5b   :  { %503 = vmatpush.bf16.msrb.mxu0 %v848_v48 }
  0x5c   :  { %597 = vmatpush.bf16.msrb.mxu1 %v856_v47 }
  0xbb   :  { %v292_v14 = vpop.f32.mrf.mxu0 }
  0xbc   :  { %v1123_v15 = vadd.f32 %v292_v14, %v149_v13  ;;  %v305_v17 = vpop.f32.mrf.mxu1 }
  0xbd   :  { %v1127_v20 = vadd.f32 %v305_v17, %v150_v16 }
  0xbe   :  { %v322_v18 = vmul.f32 %v1123_v15, %v1123_v15 }
  0xbf   :  { %v416_v25 = vmul.f32 %v1127_v20, %v1127_v20 }
  0xc0   :  { %323 = vadd.xlane.f32.xlu0 %v322_v18 }
  0xc3   :  { %v318_v21 = vpop.f32.mrf.mxu2  ;;  %v294_v23 = vpop.f32.mrf.mxu0 }
  0xc4   :  { %v1129_v22 = vadd.f32 %v318_v21, %v151_v19  ;;  %v307_v24 = vpop.f32.mrf.mxu1 }
  0xc6   :  { %v510_v26 = vmul.f32 %v1129_v22, %v1129_v22 }
  0xc8   :  { %511 = vadd.xlane.f32.xlu1 %v510_v26  ;;  %417 = vadd.xlane.f32.xlu0 %v416_v25 }
  0xcb   :  { %v320_v27 = vpop.f32.mrf.mxu2 }
 0x133   :  { %v324_v49 = vpop.xlane.xlu0 %323 }
 0x134   :  { %v325_v50 = vmax.f32 %v324_v49, 1e-12 }
 0x136   :  { %875 = vrsqrt.f32 %v325_v50  ;;  %vm332_vm1 = vweird.f32 %v325_v50 }
 0x13b   :  { %v512_v51 = vpop.xlane.xlu1 %511  ;;  %v418_v53 = vpop.xlane.xlu0 %417 }
 0x13c   :  { %v513_v52 = vmax.f32 %v512_v51, 1e-12  ;;  %v876_v54 = vpop.eup %875  ;;  %v419_v55 = vmax.f32 %v418_v53, 1e-12 }
 0x13d   :  { %v327_v56 = vmul.f32 %v876_v54, %v325_v50  ;;  %vm333_vm0 = vweird.f32 %v876_v54 }
 0x13e   :  { %877 = vrsqrt.f32 %v513_v52  ;;  %vm334_vm2 = vmor %vm332_vm1, %vm333_vm0  ;;  %vm520_vm5 = vweird.f32 %v513_v52  ;;  %vm426_vm7 = vweird.f32 %v419_v55 }
 0x13f   :  { %879 = vrsqrt.f32 %v419_v55  ;;  %v328_v57 = vmul.f32 %v876_v54, %v327_v56 }
 0x141   :  { %v329_v58 = vmul.f32 0.5, %v328_v57 }
 0x143   :  { %v330_v60 = vsub.f32 1.5, %v329_v58 }
 0x144   :  { %v878_v59 = vpop.eup %877 }
 0x145   :  { %v880_v61 = vpop.eup %879  ;;  %v515_v62 = vmul.f32 %v878_v59, %v513_v52  ;;  %v331_v0 = vmul.f32 %v876_v54, %v330_v60  ;;  %vm521_vm3 = vweird.f32 %v878_v59 }
 0x146   :  { %v421_v63 = vmul.f32 %v880_v61, %v419_v55  ;;  %vm427_vm4 = vweird.f32 %v880_v61  ;;  %vm522_vm6 = vmor %vm520_vm5, %vm521_vm3 }
 0x147   :  { %v516_v1 = vmul.f32 %v878_v59, %v515_v62  ;;  %v335_v3 = vsel %vm334_vm2, %v876_v54, %v331_v0  ;;  %vm428_vm8 = vmor %vm426_vm7, %vm427_vm4 }
 0x148   :  { %v422_v2 = vmul.f32 %v880_v61, %v421_v63  ;;  %v336_v5 = vmul.f32 %v335_v3, %v1123_v15 }
 0x149   :  { %v517_v4 = vmul.f32 0.5, %v516_v1 }
 0x14a   :  { %v423_v6 = vmul.f32 0.5, %v422_v2  ;;  %v337_v8 = vpack.c.bf16 %v336_v5, %v336_v5 }
 0x14b   :  { %v518_v7 = vsub.f32 1.5, %v517_v4 }
 0x14c   :  { %v424_v9 = vsub.f32 1.5, %v423_v6  ;;  %410 = vmatmul.bf16.vlgmr.msra.gmra.mxu3 %v337_v8 }
 0x14d   :  { %v519_v10 = vmul.f32 %v878_v59, %v518_v7 }
 0x14e   :  { %v425_v11 = vmul.f32 %v880_v61, %v424_v9 }
 0x14f   :  { %v523_v12 = vsel %vm522_vm6, %v878_v59, %v519_v10 }
 0x150   :  { %v524_v13 = vmul.f32 %v523_v12, %v1129_v22  ;;  %v429_v14 = vsel %vm428_vm8, %v880_v61, %v425_v11 }
 0x151   :  { %v430_v16 = vmul.f32 %v429_v14, %v1127_v20 }
 0x152   :  { %v525_v15 = vpack.c.bf16 %v524_v13, %v524_v13 }
 0x153   :  { %v431_v17 = vpack.c.bf16 %v430_v16, %v430_v16 }
 0x154   :  { %598 = vmatmul.bf16.vlgmr.msrb.gmra.mxu1 %v525_v15 }
 0x155   :  { %504 = vmatmul.bf16.vlgmr.msrb.gmra.mxu0 %v431_v17 }
 0x1cf   :  { %v411_v18 = vpop.f32.mrf.mxu3 }
 0x1d0   :  { %415 = vst [vmem:[#allocation13] sm:$0xff] %v411_v18 }
 0x1d1   :  { %v599_v19 = vpop.f32.mrf.mxu1 }
 0x1d2   :  { %603 = vst [vmem:[#allocation13 + $0x10] sm:$0xff] %v599_v19  ;;  %v505_v21 = vpop.f32.mrf.mxu0 }
 0x1d3   :  { %509 = vst [vmem:[#allocation13 + $0x8] sm:$0xff] %v505_v21 }
 0x1d4   :  { %614 = dma.vmem_to_hbm [thread:$0]  %s610_s5, 384, %s612_s29, [#allocation4]  }
 0x1d7   :  { %v413_v20 = vpop.f32.mrf.mxu3 }
 0x1d9   :  { %v601_v22 = vpop.f32.mrf.mxu1 }
 0x1da   :  { %v507_v23 = vpop.f32.mrf.mxu0 }
 0x1db   :  { %1057 = dma.done.wait [#allocation4], 384  }
 0x1dc   :  { %1058 = vsyncadd [#allocation4], 4294966912 }
 0x1dd   :  { %619 = vsyncpa [#allocation3], 1 }
 0x1de   :  { %620 = vsyncpa [#allocation6], 1 }
 0x1df   :  { %621 = vsyncpa [#allocation9], 1 }
 0x1e0   :  { %622 = vsyncpa [#allocation12], 1 }
 0x1e1   :  { %623 = vsyncpa [#allocation4], 1 }

</bundles_post_ra>
